<compile_context>
chip_gen: v5e
topology: v5e:2x2
jax: 0.10.0
libtpu: 0.0.40
codegen_flags: <defaults>
</compile_context>

<pallas_src>
import functools

import jax
import jax.numpy as jnp
from jax.experimental import pallas as pl
from jax.experimental.pallas import tpu as pltpu


# ---------------- helpers ---------------------------------------------------------------

_ROW_Q = 16  # sublane quantum that is valid for both bf16 (16) and f32 (8) blocks


def _round_up(x, m):
    return (x + m - 1) // m * m


# ---------------- fused decoder kernel --------------------------------------------------

def _decoder_kernel(n_hidden, *refs):
    # refs = (x_ref, w0, b0, w1, b1, ..., w_final, b_final, o_ref)
    x_ref = refs[0]
    o_ref = refs[-1]
    p_refs = refs[1:-1]

    h = x_ref[...]                                        # bf16 (tile_n, d_in_pad)
    for l in range(n_hidden):
        w = p_refs[2 * l][...]                            # bf16, lane-padded
        b = p_refs[2 * l + 1][...]                        # f32  (1, width_pad)
        z = jnp.dot(h, w, preferred_element_type=jnp.float32) + b
        z = jnp.maximum(z, 0.2 * z)                       # LeakyReLU(0.2), BN pre-folded
        h = z.astype(jnp.bfloat16)                        # bf16 MXU operand for next layer

    w = p_refs[2 * n_hidden][...]                         # bf16, lane-padded
    b = p_refs[2 * n_hidden + 1][...]                     # f32
    z = jnp.dot(h, w, preferred_element_type=jnp.float32) + b
    o_ref[...] = jnp.tanh(z)                              # padded lanes: tanh(0) = 0


# ---------------- tiling heuristics ------------------------------------------------------

def _pick_tile_n(n_rows, d_in_pad, d_out_pad, hidden_pad, param_bytes, tile_n_req):
    tile_n_req = max(_ROW_Q, _round_up(int(tile_n_req), _ROW_Q))
    n_pad = _round_up(n_rows, _ROW_Q)

    # Conservative VMEM budget: fits v7x's 64 MiB physical with headroom, and is
    # well under v5e/v6e's 128 MiB once weights are single-buffered.
    budget = 40 * 1024 * 1024
    max_w = max([d_in_pad, d_out_pad] + list(hidden_pad))
    per_row = (2 * 2 * d_in_pad        # double-buffered bf16 input tile
               + 2 * 4 * d_out_pad     # double-buffered f32 output tile
               + 2 * 4 * max_w)        # ~two live f32 intermediates
    avail = max(budget - param_bytes, _ROW_Q * per_row)
    tile_cap = max(_ROW_Q, (avail // per_row) // _ROW_Q * _ROW_Q)

    tile_n = min(tile_n_req, tile_cap, n_pad)
    if n_pad >= 2 * _ROW_Q:
        # Keep >= 2 grid steps so both v7x TensorCores get work.
        tile_n = min(tile_n, _round_up(pl.cdiv(n_pad, 2), _ROW_Q))
    tile_n = max(_ROW_Q, (tile_n // _ROW_Q) * _ROW_Q)
    return tile_n, n_pad


# ---------------- wrapper ---------------------------------------------------------------

def decoder_forward(x, kparams, *, tile_n=1024):
    """Run the fused decoder. x: (N, embedding_dim) f32. Returns (N, data_dim) f32."""
    n, d_in = x.shape
    d_in_pad = kparams["d_in_pad"]
    d_out_pad = kparams["d_out_pad"]
    data_dim = kparams["data_dim"]
    hidden = kparams["hidden"]                 # list of (w_bf16_padded, b_f32_padded)
    w_f, b_f = kparams["final"]

    flat_params = []
    for (w, b) in hidden:
        flat_params += [w, b]
    flat_params += [w_f, b_f]
    param_bytes = sum(int(p.size) * p.dtype.itemsize for p in flat_params)

    tile_n, n_pad = _pick_tile_n(
        n, d_in_pad, d_out_pad, kparams["hidden_pad"], param_bytes, tile_n)
    grid = (pl.cdiv(n_pad, tile_n),)

    # Pad features to 128 lanes, rows to the sublane quantum, cast the stream to bf16.
    x_p = jnp.pad(x, ((0, n_pad - n), (0, d_in_pad - d_in))).astype(jnp.bfloat16)

    # Input x is tiled over the batch grid; weights/biases are whole-array VMEM
    # residents (fetched once, single-buffered — no pipeline double-buffering).
    in_specs = [pl.BlockSpec((tile_n, d_in_pad), lambda i: (i, 0))]
    in_specs += [pl.BlockSpec(memory_space=pltpu.MemorySpace.VMEM)
                 for _ in flat_params]
    out_specs = pl.BlockSpec((tile_n, d_out_pad), lambda i: (i, 0))

    # Cost estimate for the XLA scheduler.
    flops = 0
    for (w, b) in [*hidden, (w_f, b_f)]:
        flops += 2 * n_pad * w.shape[0] * w.shape[1]
    bytes_accessed = 2 * n_pad * d_in_pad + 4 * n_pad * d_out_pad + param_bytes
    transcendentals = n_pad * d_out_pad          # tanh on the padded output slab

    kernel = functools.partial(_decoder_kernel, len(hidden))
    out = pl.pallas_call(
        kernel,
        out_shape=jax.ShapeDtypeStruct((n_pad, d_out_pad), jnp.float32),
        grid=grid,
        in_specs=in_specs,
        out_specs=out_specs,
        compiler_params=pltpu.CompilerParams(
            dimension_semantics=("parallel",),
            vmem_limit_bytes=50 * 1024 * 1024,
        ),
        cost_estimate=pl.CostEstimate(
            flops=int(flops),
            transcendentals=int(transcendentals),
            bytes_accessed=int(bytes_accessed),
        ),
    )(x_p, *flat_params)

    return out[:n, :data_dim]


# ---------------- parameter setup (deterministic, in-script) ----------------------------

def init_decoder_params(key, embedding_dim, decompress_dims, data_dim):
    """Returns kernel params (BN folded in f32, 128-lane padded, bf16 matmul operands)
    plus the raw f32 parameters for the un-folded pure-JAX reference."""
    eps = 1e-5
    kparams = {
        "hidden": [], "final": None, "data_dim": data_dim,
        "d_in_pad": _round_up(embedding_dim, 128),
        "hidden_pad": [_round_up(d, 128) for d in decompress_dims],
        "d_out_pad": _round_up(data_dim, 128),
    }
    rparams = {"hidden": [], "final": None, "eps": eps}

    dim, dim_pad = embedding_dim, kparams["d_in_pad"]
    for item, item_pad in zip(decompress_dims, kparams["hidden_pad"]):
        key, kw, kb, kg, kbe, km, kv = jax.random.split(key, 7)
        bound = 1.0 / jnp.sqrt(dim)
        w = jax.random.uniform(kw, (dim, item), jnp.float32, -bound, bound)
        b = jax.random.uniform(kb, (1, item), jnp.float32, -bound, bound)
        gamma = 1.0 + 0.1 * jax.random.normal(kg, (1, item), jnp.float32)
        beta = 0.1 * jax.random.normal(kbe, (1, item), jnp.float32)
        running_mean = 0.1 * jax.random.normal(km, (1, item), jnp.float32)
        running_var = 1.0 + 0.1 * jax.random.uniform(kv, (1, item), jnp.float32)
        rparams["hidden"].append((w, b, gamma, beta, running_mean, running_var))

        # Fold eval-mode BN into the Linear (in f32):
        #   y = ((x@W + b) - mean) * gamma/sqrt(var+eps) + beta
        #     = x @ (W * scale) + (b * scale + shift)
        scale = gamma / jnp.sqrt(running_var + eps)          # (1, item)
        shift = beta - running_mean * scale
        w_folded = jnp.pad(w * scale, ((0, dim_pad - dim), (0, item_pad - item)))
        b_folded = jnp.pad(b * scale + shift, ((0, 0), (0, item_pad - item)))
        kparams["hidden"].append((w_folded.astype(jnp.bfloat16), b_folded))
        dim, dim_pad = item, item_pad

    key, kw, kb = jax.random.split(key, 3)
    bound = 1.0 / jnp.sqrt(dim)
    w = jax.random.uniform(kw, (dim, data_dim), jnp.float32, -bound, bound)
    b = jax.random.uniform(kb, (1, data_dim), jnp.float32, -bound, bound)
    rparams["final"] = (w, b)

    d_out_pad = kparams["d_out_pad"]
    w_pad = jnp.pad(w, ((0, dim_pad - dim), (0, d_out_pad - data_dim)))
    b_pad = jnp.pad(b, ((0, 0), (0, d_out_pad - data_dim)))
    kparams["final"] = (w_pad.astype(jnp.bfloat16), b_pad)
    return kparams, rparams


# pure-JAX f32 reference (un-folded BN) for a sanity check
def decoder_reference(x, rparams):
    eps = rparams["eps"]
    h = x
    for (w, b, gamma, beta, mean, var) in rparams["hidden"]:
        z = h @ w + b
        z = (z - mean) / jnp.sqrt(var + eps) * gamma + beta
        h = jnp.where(z >= 0.0, z, 0.2 * z)
    w, b = rparams["final"]
    return jnp.tanh(h @ w + b)


if __name__ == "__main__":
    key = jax.random.PRNGKey(0)
    batch = 8
    embedding_dim = 32
    decompress_dims = (64, 128)
    data_dim = 32

    kx, kp = jax.random.split(key)
    x = jax.random.normal(kx, (batch, embedding_dim), jnp.float32)
    kparams, rparams = init_decoder_params(kp, embedding_dim, decompress_dims, data_dim)

    out = decoder_forward(x, kparams)
    out = jax.block_until_ready(out)

    ref = decoder_reference(x, rparams)
    assert out.shape == (batch, data_dim)
    # bf16 matmul operands -> relaxed tolerance vs the f32 reference.
    assert jnp.allclose(out, ref, atol=3e-2, rtol=3e-2), float(jnp.max(jnp.abs(out - ref)))

    print("KERNEL_OK")
</pallas_src>

<mosaic_0001>
module attributes {stable_mosaic.version = 11 : i64} {
  func.func @_decoder_kernel(%arg0: i32, %arg1: memref<16x128xbf16, #tpu.memory_space<vmem>>, %arg2: memref<128x128xbf16, #tpu.memory_space<vmem>>, %arg3: memref<1x128xf32, #tpu.memory_space<vmem>>, %arg4: memref<128x128xbf16, #tpu.memory_space<vmem>>, %arg5: memref<1x128xf32, #tpu.memory_space<vmem>>, %arg6: memref<128x128xbf16, #tpu.memory_space<vmem>>, %arg7: memref<1x128xf32, #tpu.memory_space<vmem>>, %arg8: memref<16x128xf32, #tpu.memory_space<vmem>>) attributes {dimension_semantics = [#tpu.dimension_semantics<parallel>], iteration_bounds = array<i64: 1>, scalar_prefetch = 0 : i64, scratch_operands = 0 : i64, tpu.core_type = #tpu.core_type<tc>, window_params = [{transform_indices = @transform_0, window_bounds = array<i64: 16, 128>}, {pipeline_mode = #tpu.pipeline_mode<synchronous>, transform_indices = @transform_1, window_bounds = array<i64: 128, 128>}, {pipeline_mode = #tpu.pipeline_mode<synchronous>, transform_indices = @transform_2, window_bounds = array<i64: 1, 128>}, {pipeline_mode = #tpu.pipeline_mode<synchronous>, transform_indices = @transform_3, window_bounds = array<i64: 128, 128>}, {pipeline_mode = #tpu.pipeline_mode<synchronous>, transform_indices = @transform_4, window_bounds = array<i64: 1, 128>}, {pipeline_mode = #tpu.pipeline_mode<synchronous>, transform_indices = @transform_5, window_bounds = array<i64: 128, 128>}, {pipeline_mode = #tpu.pipeline_mode<synchronous>, transform_indices = @transform_6, window_bounds = array<i64: 1, 128>}, {transform_indices = @transform_7, window_bounds = array<i64: 16, 128>}]} {
    %c0 = arith.constant 0 : index
    %c0_0 = arith.constant 0 : index
    %0 = vector.load %arg1[%c0, %c0_0] : memref<16x128xbf16, #tpu.memory_space<vmem>>, vector<16x128xbf16>
    %c0_1 = arith.constant 0 : index
    %c0_2 = arith.constant 0 : index
    %1 = vector.load %arg2[%c0_1, %c0_2] : memref<128x128xbf16, #tpu.memory_space<vmem>>, vector<128x128xbf16>
    %c0_3 = arith.constant 0 : index
    %c0_4 = arith.constant 0 : index
    %2 = vector.load %arg3[%c0_3, %c0_4] : memref<1x128xf32, #tpu.memory_space<vmem>>, vector<1x128xf32>
    %cst = arith.constant dense<0.000000e+00> : vector<16x128xf32>
    %3 = tpu.matmul %0, %1, %cst {dimension_numbers = #tpu.dot_dimension_numbers<[1], [0], [0], [1], [0, 0, 1, 1], [], []>} : vector<16x128xbf16>, vector<128x128xbf16>, vector<16x128xf32> -> vector<16x128xf32>
    %4 = vector.broadcast %2 : vector<1x128xf32> to vector<16x128xf32>
    %5 = arith.addf %3, %4 : vector<16x128xf32>
    %cst_5 = arith.constant 2.000000e-01 : f32
    %6 = vector.broadcast %cst_5 : f32 to vector<16x128xf32>
    %7 = arith.mulf %6, %5 : vector<16x128xf32>
    %8 = arith.maximumf %5, %7 : vector<16x128xf32>
    %9 = arith.truncf %8 : vector<16x128xf32> to vector<16x128xbf16>
    %c0_6 = arith.constant 0 : index
    %c0_7 = arith.constant 0 : index
    %10 = vector.load %arg4[%c0_6, %c0_7] : memref<128x128xbf16, #tpu.memory_space<vmem>>, vector<128x128xbf16>
    %c0_8 = arith.constant 0 : index
    %c0_9 = arith.constant 0 : index
    %11 = vector.load %arg5[%c0_8, %c0_9] : memref<1x128xf32, #tpu.memory_space<vmem>>, vector<1x128xf32>
    %cst_10 = arith.constant dense<0.000000e+00> : vector<16x128xf32>
    %12 = tpu.matmul %9, %10, %cst_10 {dimension_numbers = #tpu.dot_dimension_numbers<[1], [0], [0], [1], [0, 0, 1, 1], [], []>} : vector<16x128xbf16>, vector<128x128xbf16>, vector<16x128xf32> -> vector<16x128xf32>
    %13 = vector.broadcast %11 : vector<1x128xf32> to vector<16x128xf32>
    %14 = arith.addf %12, %13 : vector<16x128xf32>
    %cst_11 = arith.constant 2.000000e-01 : f32
    %15 = vector.broadcast %cst_11 : f32 to vector<16x128xf32>
    %16 = arith.mulf %15, %14 : vector<16x128xf32>
    %17 = arith.maximumf %14, %16 : vector<16x128xf32>
    %18 = arith.truncf %17 : vector<16x128xf32> to vector<16x128xbf16>
    %c0_12 = arith.constant 0 : index
    %c0_13 = arith.constant 0 : index
    %19 = vector.load %arg6[%c0_12, %c0_13] : memref<128x128xbf16, #tpu.memory_space<vmem>>, vector<128x128xbf16>
    %c0_14 = arith.constant 0 : index
    %c0_15 = arith.constant 0 : index
    %20 = vector.load %arg7[%c0_14, %c0_15] : memref<1x128xf32, #tpu.memory_space<vmem>>, vector<1x128xf32>
    %cst_16 = arith.constant dense<0.000000e+00> : vector<16x128xf32>
    %21 = tpu.matmul %18, %19, %cst_16 {dimension_numbers = #tpu.dot_dimension_numbers<[1], [0], [0], [1], [0, 0, 1, 1], [], []>} : vector<16x128xbf16>, vector<128x128xbf16>, vector<16x128xf32> -> vector<16x128xf32>
    %22 = vector.broadcast %20 : vector<1x128xf32> to vector<16x128xf32>
    %23 = arith.addf %21, %22 : vector<16x128xf32>
    %24 = math.tanh %23 : vector<16x128xf32>
    %c0_17 = arith.constant 0 : index
    %c0_18 = arith.constant 0 : index
    %25 = vector.load %arg8[%c0_17, %c0_18] : memref<16x128xf32, #tpu.memory_space<vmem>>, vector<16x128xf32>
    tpu.vector_store %arg8[%c0_17, %c0_18], %24 {strides = array<i32>} : memref<16x128xf32, #tpu.memory_space<vmem>>, vector<16x128xf32>,
    return
  }
  func.func @transform_0(%arg0: i32) -> (i32, i32) {
    %c0_i32 = arith.constant 0 : i32
    %c0_i32_0 = arith.constant 0 : i32
    return %arg0, %c0_i32 : i32, i32
  }
  func.func @transform_1(%arg0: i32) -> (i32, i32) {
    %c0_i32 = arith.constant 0 : i32
    %c0_i32_0 = arith.constant 0 : i32
    %c0_i32_1 = arith.constant 0 : i32
    return %c0_i32, %c0_i32_0 : i32, i32
  }
  func.func @transform_2(%arg0: i32) -> (i32, i32) {
    %c0_i32 = arith.constant 0 : i32
    %c0_i32_0 = arith.constant 0 : i32
    %c0_i32_1 = arith.constant 0 : i32
    return %c0_i32, %c0_i32_0 : i32, i32
  }
  func.func @transform_3(%arg0: i32) -> (i32, i32) {
    %c0_i32 = arith.constant 0 : i32
    %c0_i32_0 = arith.constant 0 : i32
    %c0_i32_1 = arith.constant 0 : i32
    return %c0_i32, %c0_i32_0 : i32, i32
  }
  func.func @transform_4(%arg0: i32) -> (i32, i32) {
    %c0_i32 = arith.constant 0 : i32
    %c0_i32_0 = arith.constant 0 : i32
    %c0_i32_1 = arith.constant 0 : i32
    return %c0_i32, %c0_i32_0 : i32, i32
  }
  func.func @transform_5(%arg0: i32) -> (i32, i32) {
    %c0_i32 = arith.constant 0 : i32
    %c0_i32_0 = arith.constant 0 : i32
    %c0_i32_1 = arith.constant 0 : i32
    return %c0_i32, %c0_i32_0 : i32, i32
  }
  func.func @transform_6(%arg0: i32) -> (i32, i32) {
    %c0_i32 = arith.constant 0 : i32
    %c0_i32_0 = arith.constant 0 : i32
    %c0_i32_1 = arith.constant 0 : i32
    return %c0_i32, %c0_i32_0 : i32, i32
  }
  func.func @transform_7(%arg0: i32) -> (i32, i32) {
    %c0_i32 = arith.constant 0 : i32
    %c0_i32_0 = arith.constant 0 : i32
    return %arg0, %c0_i32 : i32, i32
  }
}

</mosaic_0001>

<bundles_post_ra>
// kernel: tpu_custom_call.1
= control target key start
LH: loop header
LB: loop body
LE: loop exit
PB: predicated region body
PF: predicated region fallthrough
CT: control target
= control target key end

     0   :  { %12 = vsyncpa [#allocation3], 0  ;;  %s721_s0 = inlined_call_operand.hbm [shape: bf16[16,128], index: 0, kind: input, shape index: {}]   ;;  %s722_s1 = inlined_call_operand.hbm [shape: bf16[128,128], index: 1, kind: input, shape index: {}]   ;;  %s723_s2 = inlined_call_operand.vmem [shape: f32[1,128], index: 2, kind: input, shape index: {}]   ;;  %s724_s3 = inlined_call_operand.hbm [shape: bf16[128,128], index: 3, kind: input, shape index: {}]   ;;  %s725_s4 = inlined_call_operand.vmem [shape: f32[1,128], index: 4, kind: input, shape index: {}]   ;;  %s726_s5 = inlined_call_operand.hbm [shape: bf16[128,128], index: 5, kind: input, shape index: {}]   ;;  %s727_s6 = inlined_call_operand.vmem [shape: f32[1,128], index: 6, kind: input, shape index: {}]   ;;  %s728_s7 = inlined_call_operand.hbm [shape: f32[16,128], index: 7, kind: output, shape index: {}]  }
   0x1   :  { %13 = vsyncpa [#allocation6], 0 }
   0x2   :  { %14 = vsyncpa [#allocation9], 0 }
   0x3   :  { %15 = vsyncpa [#allocation4], 0  ;;  %s33_s26 = sshll.u32 %s722_s1, 4  ;;  %s648_s27 = smov [#allocation5]   ;;  %s34_s26 = int_to_ptr.hbm [resolvable:$true] %s33_s26 }
   0x4   :  { %s35_s28 = sshll.u32 %s648_s27, 4  ;;  %s20_s8 = sshll.u32 %s721_s0, 4  ;;  %s36_s28 = int_to_ptr.vmem [resolvable:$true] %s35_s28  ;;  %s21_s8 = int_to_ptr.hbm [resolvable:$true] %s20_s8 }
   0x5   :  { %s649_s9 = smov 64   ;;  %s650_s10 = smov 4  }
   0x6   :  { %41 = dma.hbm_to_vmem [thread:$0]  %s34_s26, 1024, %s36_s28, [#allocation6], %s649_s9, %s649_s9, %s650_s10  }
   0x7   :  { %s651_s11 = smov [#allocation2]   ;;  %s48_s15 = sshll.u32 %s724_s3, 4  ;;  %s49_s15 = int_to_ptr.hbm [resolvable:$true] %s48_s15 }
   0x8   :  { %s22_s12 = sshll.u32 %s651_s11, 4  ;;  %s63_s17 = sshll.u32 %s726_s5, 4  ;;  %s23_s12 = int_to_ptr.vmem [resolvable:$true] %s22_s12  ;;  %s64_s17 = int_to_ptr.hbm [resolvable:$true] %s63_s17 }
   0x9   :  { %28 = dma.hbm_to_vmem [thread:$0]  %s21_s8, 128, %s23_s12, [#allocation3], %s649_s9, %s649_s9, %s650_s10  }
   0xa   :  { %s652_s18 = smov [#allocation7]   ;;  %s653_s0 = smov [#allocation8]  }
   0xb   :  { %s50_s19 = sshll.u32 %s652_s18, 4  ;;  %s65_s20 = sshll.u32 %s653_s0, 4  ;;  %s51_s19 = int_to_ptr.vmem [resolvable:$true] %s50_s19  ;;  %s66_s20 = int_to_ptr.vmem [resolvable:$true] %s65_s20 }
   0xc   :  { %56 = dma.hbm_to_vmem [thread:$0]  %s49_s15, 1024, %s51_s19, [#allocation6], %s649_s9, %s649_s9, %s650_s10  }
   0xd   :  { %71 = dma.hbm_to_vmem [thread:$0]  %s64_s17, 1024, %s66_s20, [#allocation9], %s649_s9, %s649_s9, %s650_s10  }
   0xe   :  { %640 = dma.done.wait [#allocation3], 128  }
   0xf   :  { %641 = vsyncadd [#allocation3], 4294967168 }
  0x10   :  { %642 = dma.done.wait [#allocation6], 2048  }
  0x11   :  { %643 = vsyncadd [#allocation6], 4294965248 }
  0x12   :  { %644 = dma.done.wait [#allocation9], 1024  }
  0x13   :  { %645 = vsyncadd [#allocation9], 4294966272  ;;  %v487_v0 = vld [vmem:[#allocation5 + $0x38] sm:$0xff]  ;;  %v486_v1 = vld [vmem:[#allocation5 + $0x30] sm:$0xff]  ;;  %s364_s27 = sshll.u32 %s728_s7, 4  ;;  %s655_s28 = smov 128   ;;  %s365_s27 = int_to_ptr.hbm [resolvable:$true] %s364_s27 }
  0x14   :  { %166 = vmatpush.bf16.msra.mxu0 %v487_v0  ;;  %v495_v2 = vld [vmem:[#allocation7 + $0x38] sm:$0xff]  ;;  %v494_v3 = vld [vmem:[#allocation7 + $0x30] sm:$0xff]  ;;  %v485_v4 = vld [vmem:[#allocation5 + $0x28] sm:$0xff] }
  0x15   :  { %253 = vmatpush.bf16.msra.mxu1 %v495_v2  ;;  %v493_v5 = vld [vmem:[#allocation7 + $0x28] sm:$0xff]  ;;  %v484_v6 = vld [vmem:[#allocation5 + $0x20] sm:$0xff]  ;;  %v483_v8 = vld [vmem:[#allocation5 + $0x18] sm:$0xff] }
  0x16   :  { %v492_v7 = vld [vmem:[#allocation7 + $0x20] sm:$0xff]  ;;  %v482_v9 = vld [vmem:[#allocation5 + $0x10] sm:$0xff]  ;;  %v481_v10 = vld [vmem:[#allocation5 + $0x8] sm:$0xff] }
  0x17   :  { %v480_v11 = vld [vmem:[#allocation5] sm:$0xff]  ;;  %v479_v12 = vld [vmem:[#allocation2] sm:$0xff]  ;;  %v490_v14 = vld [vmem:[#allocation7 + $0x10] sm:$0xff] }
  0x18   :  { %167 = vmatpush.bf16.msra.mxu0 %v486_v1  ;;  %v491_v13 = vld [vmem:[#allocation7 + $0x18] sm:$0xff]  ;;  %v489_v15 = vld [vmem:[#allocation7 + $0x8] sm:$0xff]  ;;  %v488_v16 = vld [vmem:[#allocation7] sm:$0xff] }
  0x19   :  { %254 = vmatpush.bf16.msra.mxu1 %v494_v3  ;;  %v503_v17 = vld [vmem:[#allocation8 + $0x38] sm:$0xff]  ;;  %v502_v18 = vld [vmem:[#allocation8 + $0x30] sm:$0xff]  ;;  %v501_v19 = vld [vmem:[#allocation8 + $0x28] sm:$0xff] }
  0x1a   :  { %340 = vmatpush.bf16.msra.mxu2 %v503_v17  ;;  %v500_v20 = vld [vmem:[#allocation8 + $0x20] sm:$0xff]  ;;  %v513_v22 = vld [vmem:[%s723_s2] ss:$0 sm:$0xff]  ;;  %v498_v32 = vld [vmem:[#allocation8 + $0x10] sm:$0xff] }
  0x1b   :  { %v499_v31 = vld [vmem:[#allocation8 + $0x18] sm:$0xff]  ;;  %v497_v33 = vld [vmem:[#allocation8 + $0x8] sm:$0xff]  ;;  %v496_v34 = vld [vmem:[#allocation8] sm:$0xff] }
  0x1c   :  { %168 = vmatpush.bf16.msra.mxu0 %v485_v4  ;;  %v514_v36 = vld [vmem:[%s725_s4] ss:$0 sm:$0xff]  ;;  %s654_s4 = smov [#allocation10]  }
  0x1d   :  { %255 = vmatpush.bf16.msra.mxu1 %v493_v5  ;;  %v515_v45 = vld [vmem:[%s727_s6] ss:$0 sm:$0xff]  ;;  %s362_s24 = sshll.u32 %s654_s4, 4  ;;  %s656_s6 = smov 8   ;;  %s363_s24 = int_to_ptr.vmem [resolvable:$true] %s362_s24 }
  0x1e   :  { %341 = vmatpush.bf16.msra.mxu2 %v502_v18 }
  0x20   :  { %169 = vmatpush.bf16.msra.mxu0 %v484_v6 }
  0x21   :  { %256 = vmatpush.bf16.msra.mxu1 %v492_v7 }
  0x22   :  { %342 = vmatpush.bf16.msra.mxu2 %v501_v19 }
  0x24   :  { %170 = vmatpush.bf16.msra.mxu0 %v483_v8 }
  0x25   :  { %257 = vmatpush.bf16.msra.mxu1 %v491_v13 }
  0x26   :  { %343 = vmatpush.bf16.msra.mxu2 %v500_v20 }
  0x28   :  { %171 = vmatpush.bf16.msra.mxu0 %v482_v9 }
  0x29   :  { %258 = vmatpush.bf16.msra.mxu1 %v490_v14 }
  0x2a   :  { %344 = vmatpush.bf16.msra.mxu2 %v499_v31 }
  0x2c   :  { %172 = vmatpush.bf16.msra.mxu0 %v481_v10 }
  0x2d   :  { %259 = vmatpush.bf16.msra.mxu1 %v489_v15 }
  0x2e   :  { %345 = vmatpush.bf16.msra.mxu2 %v498_v32 }
  0x30   :  { %173 = vmatpush.bf16.msra.mxu0 %v480_v11 }
  0x31   :  { %260 = vmatpush.bf16.msra.mxu1 %v488_v16 }
  0x32   :  { %346 = vmatpush.bf16.msra.mxu2 %v497_v33 }
  0x33   :  { %174 = vmatmul.bf16.vlgmr.msra.gmra.mxu0 %v479_v12 }
  0x36   :  { %347 = vmatpush.bf16.msra.mxu2 %v496_v34 }
  0xb0   :  { %v175_v21 = vpop.f32.mrf.mxu0 }
  0xb1   :  { %v176_v23 = vadd.f32 %v513_v22, %v175_v21 }
  0xb3   :  { %v180_v25 = vmul.f32 0.2, %v176_v23 }
  0xb5   :  { %v182_v28 = vmax.f32 %v176_v23, %v180_v25 }
  0xb8   :  { %v177_v24 = vpop.f32.mrf.mxu0 }
  0xb9   :  { %v178_v26 = vadd.f32 %v513_v22, %v177_v24 }
  0xbb   :  { %v181_v27 = vmul.f32 0.2, %v178_v26 }
  0xbd   :  { %v183_v29 = vmax.f32 %v178_v26, %v181_v27 }
  0xbf   :  { %v184_v30 = vpack.c.bf16 %v183_v29, %v182_v28 }
  0xc1   :  { %261 = vmatmul.bf16.vlgmr.msra.gmra.mxu1 %v184_v30 }
 0x13e   :  { %v262_v35 = vpop.f32.mrf.mxu1 }
 0x13f   :  { %v263_v37 = vadd.f32 %v514_v36, %v262_v35 }
 0x141   :  { %v267_v39 = vmul.f32 0.2, %v263_v37 }
 0x143   :  { %v269_v42 = vmax.f32 %v263_v37, %v267_v39 }
 0x146   :  { %v264_v38 = vpop.f32.mrf.mxu1 }
 0x147   :  { %v265_v40 = vadd.f32 %v514_v36, %v264_v38 }
 0x149   :  { %v268_v41 = vmul.f32 0.2, %v265_v40 }
 0x14b   :  { %v270_v43 = vmax.f32 %v265_v40, %v268_v41 }
 0x14d   :  { %v271_v44 = vpack.c.bf16 %v270_v43, %v269_v42 }
 0x14f   :  { %348 = vmatmul.bf16.vlgmr.msra.gmra.mxu2 %v271_v44 }
 0x1d2   :  { %v349_v46 = vpop.f32.mrf.mxu2 }
 0x1d3   :  { %v350_v47 = vadd.f32 %v515_v45, %v349_v46 }
 0x1d5   :  { %516 = vtanh.f32 %v350_v47 }
 0x1da   :  { %v351_v48 = vpop.f32.mrf.mxu2 }
 0x1db   :  { %v517_v49 = vpop.eup %516  ;;  %v352_v50 = vadd.f32 %v515_v45, %v351_v48 }
 0x1dc   :  { %356 = vst [vmem:[#allocation10] sm:$0xff] %v517_v49 }
 0x1dd   :  { %518 = vtanh.f32 %v352_v50 }
 0x1e3   :  { %v519_v51 = vpop.eup %518 }
 0x1e4   :  { %357 = vst [vmem:[#allocation10 + $0x8] sm:$0xff] %v519_v51 }
 0x1e5   :  { %370 = dma.vmem_to_hbm [thread:$0]  %s363_s24, 256, %s365_s27, [#allocation4], %s655_s28, %s655_s28, %s656_s6  }
 0x1e6   :  { %646 = dma.done.wait [#allocation4], 256  }
 0x1e7   :  { %647 = vsyncadd [#allocation4], 4294967040 }
 0x1e8   :  { %375 = vsyncpa [#allocation3], 1 }
 0x1e9   :  { %376 = vsyncpa [#allocation6], 1 }
 0x1ea   :  { %377 = vsyncpa [#allocation9], 1 }
 0x1eb   :  { %378 = vsyncpa [#allocation4], 1 }

</bundles_post_ra>
